<compile_context>
chip_gen: v7x
topology: tpu7x:2x2x1
jax: 0.10.0
libtpu: 0.0.40
codegen_flags: <defaults>
</compile_context>

<pallas_src>
import jax
import jax.numpy as jnp
from jax.experimental import pallas as pl
from jax.experimental.pallas import tpu as pltpu

_LANE = 128
_MAX_GRID_STEPS = 2         # "parallel" grid -> one step per v7x TensorCore
_MAX_INFLIGHT = 4           # DMA chunks kept in flight per grid step
_MIN_CHUNK_BYTES = 1 << 20  # don't bother splitting below ~1 MiB per chunk


def _sublane_quantum(dtype) -> int:
    # Rows per vreg tile: 8 for 4-byte, 16 for 2-byte, 32 for 1-byte dtypes.
    itemsize = jnp.dtype(dtype).itemsize
    return max(8, 8 * (4 // max(1, itemsize)))


def _chunk_plan(rows, row_bytes, quantum):
    """Static plan: one list of (row_start, row_count) chunks per grid step."""
    total_bytes = rows * row_bytes
    max_chunks = _MAX_GRID_STEPS * _MAX_INFLIGHT
    n_chunks = int(min(max_chunks, rows, max(1, total_bytes // _MIN_CHUNK_BYTES)))
    if rows >= 2:
        # At least 2 chunks so both v7x TensorCores get a slice of the copy.
        n_chunks = max(n_chunks, 2)

    # Chunk boundaries, aligned to the dtype sublane quantum when sensible so
    # each DMA covers whole (quantum, 128) tiles (contiguous HBM bytes).
    align = quantum if rows >= 2 * quantum else 1
    bounds = [0]
    for k in range(1, n_chunks):
        b = (rows * k) // n_chunks
        b -= b % align
        if b > bounds[-1]:
            bounds.append(b)
    bounds.append(rows)
    chunks = [(lo, hi - lo) for lo, hi in zip(bounds[:-1], bounds[1:]) if hi > lo]

    if len(chunks) >= 2:
        half = (len(chunks) + 1) // 2
        steps = [chunks[:half], chunks[half:]]
    else:
        steps = [chunks]
    assert all(1 <= len(s) <= _MAX_INFLIGHT for s in steps)
    return steps


def _make_hbm_copy_kernel(step_plans):
    """Kernel: each grid step DMAs its statically-planned row chunks HBM->HBM."""
    n_steps = len(step_plans)

    def kernel(x_ref, o_ref, sems):
        def issue(plan):
            copies = [
                pltpu.make_async_copy(
                    x_ref.at[pl.ds(lo, n), :],
                    o_ref.at[pl.ds(lo, n), :],
                    sems.at[j],
                )
                for j, (lo, n) in enumerate(plan)
            ]
            for c in copies:      # keep all chunks of this step in flight
                c.start()
            for c in copies:
                c.wait()

        if n_steps == 1:
            issue(step_plans[0])
        else:
            step_id = pl.program_id(0)
            for s, plan in enumerate(step_plans):
                @pl.when(step_id == s)
                def _(plan=plan):
                    issue(plan)

    return kernel


def _pallas_identity_copy(x):
    """Identity copy of x via a pure HBM->HBM DMA Pallas kernel (no VMEM staging)."""
    total = x.size
    if total == 0:
        return x
    itemsize = jnp.dtype(x.dtype).itemsize

    # Lane-dense 2D view so row-sliced DMA chunks land on (sublane, 128) tile
    # boundaries.  If the element count is not a multiple of 128, fall back to
    # a single-row view: still just one whole-array DMA, zero VMEM used.
    cols = _LANE if total % _LANE == 0 else total
    rows = total // cols
    x2d = x.reshape(rows, cols)

    step_plans = _chunk_plan(rows, cols * itemsize, _sublane_quantum(x.dtype))

    out2d = pl.pallas_call(
        _make_hbm_copy_kernel(step_plans),
        out_shape=jax.ShapeDtypeStruct((rows, cols), x.dtype),
        grid=(len(step_plans),),
        in_specs=[pl.BlockSpec(memory_space=pl.ANY)],
        out_specs=pl.BlockSpec(memory_space=pl.ANY),
        scratch_shapes=[pltpu.SemaphoreType.DMA((_MAX_INFLIGHT,))],
        compiler_params=pltpu.CompilerParams(
            dimension_semantics=("parallel",),  # v7x: one grid step per TensorCore
        ),
        cost_estimate=pl.CostEstimate(
            flops=0, transcendentals=0, bytes_accessed=2 * total * itemsize
        ),
    )(x2d)
    return out2d.reshape(x.shape)


class MemoryBase:
    """JAX/Pallas mirror of pt_tnn MemoryBase (abstract memory module).

    Base-class forward semantics: identity memory (requires out == in
    channels).  short_circuit=True (default, recommended) returns x untouched
    — the fastest identity is no kernel.  Set short_circuit=False to route
    through the HBM->HBM DMA copy kernel when a distinct output buffer is
    required.
    """

    def __init__(self, in_channels: int, out_channels: int, short_circuit: bool = True):
        self._in_channels = in_channels
        self._out_channels = out_channels
        self._short_circuit = short_circuit

    @property
    def in_channels(self):
        return self._in_channels

    @property
    def out_channels(self):
        return self._out_channels

    def __call__(self, x: jax.Array) -> jax.Array:
        # x: [N, C, H, W] (NCHW). Base-class semantics: identity memory.
        assert x.ndim == 4, "expected NCHW input"
        n, c, h, w = x.shape
        assert c == self._in_channels, (
            f"channel mismatch: got {c}, expected {self._in_channels}"
        )
        if self._in_channels != self._out_channels:
            # TODO(synk): channel-changing compute is defined only by concrete
            # MemoryBase subclasses; the abstract base has nothing to translate.
            raise NotImplementedError(
                "MemoryBase identity pass-through requires out_channels == "
                "in_channels; a concrete subclass must define channel-changing "
                "semantics."
            )
        if self._short_circuit:
            # Fastest identity: no kernel launch, no HBM round trip.
            return x
        return _pallas_identity_copy(x)


if __name__ == "__main__":
    key = jax.random.PRNGKey(0)
    N, C, H, W = 2, 4, 16, 16
    x = jax.random.normal(key, (N, C, H, W), dtype=jnp.float32)

    # Default (recommended) path: identity memory, no kernel, no HBM traffic.
    assert MemoryBase(C, C)(x) is x

    # Kernel path: force the HBM->HBM DMA copy and validate it.
    module = MemoryBase(C, C, short_circuit=False)
    y = jax.block_until_ready(module(x))

    assert y.shape == (N, C, H, W)
    assert y.dtype == x.dtype
    assert bool(jnp.array_equal(y, x)), "identity pass-through mismatch"

    print("KERNEL_OK")
</pallas_src>

<mosaic_0001>
module attributes {stable_mosaic.version = 11 : i64} {
  func.func @kernel(%arg0: i32, %arg1: memref<16x128xf32, #tpu.memory_space<any>>, %arg2: memref<16x128xf32, #tpu.memory_space<any>>, %arg3: memref<4x!tpu.dma_semaphore, #tpu.memory_space<semaphore_mem>>) attributes {dimension_semantics = [#tpu.dimension_semantics<parallel>], iteration_bounds = array<i64: 2>, scalar_prefetch = 0 : i64, scratch_operands = 1 : i64, tpu.core_type = #tpu.core_type<tc>, window_params = [{}, {}]} {
    %c0_i32 = arith.constant 0 : i32
    %0 = arith.cmpi eq, %arg0, %c0_i32 : i32
    %1 = arith.extui %0 : i1 to i32
    %c0_i32_0 = arith.constant 0 : i32
    %2 = arith.cmpi ne, %1, %c0_i32_0 : i32
    scf.if %2 {
      %c0_i32_2 = arith.constant 0 : i32
      %c0_i32_3 = arith.constant 0 : i32
      %c0_i32_4 = arith.constant 0 : i32
      %6 = tpu.memref_slice %arg1[%c0_i32_3, %c0_i32_4] : memref<16x128xf32, #tpu.memory_space<any>> -> memref<8x128xf32, #tpu.memory_space<any>>
      %c0_i32_5 = arith.constant 0 : i32
      %c0_i32_6 = arith.constant 0 : i32
      %7 = tpu.memref_slice %arg2[%c0_i32_5, %c0_i32_6] : memref<16x128xf32, #tpu.memory_space<any>> -> memref<8x128xf32, #tpu.memory_space<any>>
      %8 = tpu.memref_slice %arg3[%c0_i32_2] : memref<4x!tpu.dma_semaphore, #tpu.memory_space<semaphore_mem>> -> memref<1x!tpu.dma_semaphore, #tpu.memory_space<semaphore_mem>>
      %9 = tpu.memref_squeeze %8 : memref<1x!tpu.dma_semaphore, #tpu.memory_space<semaphore_mem>> -> memref<!tpu.dma_semaphore, #tpu.memory_space<semaphore_mem>>
      tpu.enqueue_dma source(%6 : memref<8x128xf32, #tpu.memory_space<any>>) target(%7 : memref<8x128xf32, #tpu.memory_space<any>>) target_semaphore(%9 : memref<!tpu.dma_semaphore, #tpu.memory_space<semaphore_mem>>)
      %c0_i32_7 = arith.constant 0 : i32
      %c0_i32_8 = arith.constant 0 : i32
      %c0_i32_9 = arith.constant 0 : i32
      %10 = tpu.memref_slice %arg1[%c0_i32_8, %c0_i32_9] : memref<16x128xf32, #tpu.memory_space<any>> -> memref<8x128xf32, #tpu.memory_space<any>>
      %c0_i32_10 = arith.constant 0 : i32
      %c0_i32_11 = arith.constant 0 : i32
      %11 = tpu.memref_slice %arg2[%c0_i32_10, %c0_i32_11] : memref<16x128xf32, #tpu.memory_space<any>> -> memref<8x128xf32, #tpu.memory_space<any>>
      %12 = tpu.memref_slice %arg3[%c0_i32_7] : memref<4x!tpu.dma_semaphore, #tpu.memory_space<semaphore_mem>> -> memref<1x!tpu.dma_semaphore, #tpu.memory_space<semaphore_mem>>
      %13 = tpu.memref_squeeze %12 : memref<1x!tpu.dma_semaphore, #tpu.memory_space<semaphore_mem>> -> memref<!tpu.dma_semaphore, #tpu.memory_space<semaphore_mem>>
      tpu.wait_dma2 semaphore(%13 : memref<!tpu.dma_semaphore, #tpu.memory_space<semaphore_mem>>) src(%10 : memref<8x128xf32, #tpu.memory_space<any>>) dst(%11 : memref<8x128xf32, #tpu.memory_space<any>>)
    } else {
    }
    %c1_i32 = arith.constant 1 : i32
    %3 = arith.cmpi eq, %arg0, %c1_i32 : i32
    %4 = arith.extui %3 : i1 to i32
    %c0_i32_1 = arith.constant 0 : i32
    %5 = arith.cmpi ne, %4, %c0_i32_1 : i32
    scf.if %5 {
      %c0_i32_2 = arith.constant 0 : i32
      %c8_i32 = arith.constant 8 : i32
      %c0_i32_3 = arith.constant 0 : i32
      %6 = tpu.memref_slice %arg1[%c8_i32, %c0_i32_3] : memref<16x128xf32, #tpu.memory_space<any>> -> memref<8x128xf32, #tpu.memory_space<any>>
      %c8_i32_4 = arith.constant 8 : i32
      %c0_i32_5 = arith.constant 0 : i32
      %7 = tpu.memref_slice %arg2[%c8_i32_4, %c0_i32_5] : memref<16x128xf32, #tpu.memory_space<any>> -> memref<8x128xf32, #tpu.memory_space<any>>
      %8 = tpu.memref_slice %arg3[%c0_i32_2] : memref<4x!tpu.dma_semaphore, #tpu.memory_space<semaphore_mem>> -> memref<1x!tpu.dma_semaphore, #tpu.memory_space<semaphore_mem>>
      %9 = tpu.memref_squeeze %8 : memref<1x!tpu.dma_semaphore, #tpu.memory_space<semaphore_mem>> -> memref<!tpu.dma_semaphore, #tpu.memory_space<semaphore_mem>>
      tpu.enqueue_dma source(%6 : memref<8x128xf32, #tpu.memory_space<any>>) target(%7 : memref<8x128xf32, #tpu.memory_space<any>>) target_semaphore(%9 : memref<!tpu.dma_semaphore, #tpu.memory_space<semaphore_mem>>)
      %c0_i32_6 = arith.constant 0 : i32
      %c8_i32_7 = arith.constant 8 : i32
      %c0_i32_8 = arith.constant 0 : i32
      %10 = tpu.memref_slice %arg1[%c8_i32_7, %c0_i32_8] : memref<16x128xf32, #tpu.memory_space<any>> -> memref<8x128xf32, #tpu.memory_space<any>>
      %c8_i32_9 = arith.constant 8 : i32
      %c0_i32_10 = arith.constant 0 : i32
      %11 = tpu.memref_slice %arg2[%c8_i32_9, %c0_i32_10] : memref<16x128xf32, #tpu.memory_space<any>> -> memref<8x128xf32, #tpu.memory_space<any>>
      %12 = tpu.memref_slice %arg3[%c0_i32_6] : memref<4x!tpu.dma_semaphore, #tpu.memory_space<semaphore_mem>> -> memref<1x!tpu.dma_semaphore, #tpu.memory_space<semaphore_mem>>
      %13 = tpu.memref_squeeze %12 : memref<1x!tpu.dma_semaphore, #tpu.memory_space<semaphore_mem>> -> memref<!tpu.dma_semaphore, #tpu.memory_space<semaphore_mem>>
      tpu.wait_dma2 semaphore(%13 : memref<!tpu.dma_semaphore, #tpu.memory_space<semaphore_mem>>) src(%10 : memref<8x128xf32, #tpu.memory_space<any>>) dst(%11 : memref<8x128xf32, #tpu.memory_space<any>>)
    } else {
    }
    return
  }
}

</mosaic_0001>

<bundles_post_ra>
// kernel: tpu_custom_call.1
= control target key start
LH: loop header
LB: loop body
LE: loop exit
PB: predicated region body
PF: predicated region fallthrough
CT: control target
= control target key end

     0   :  { %s125_s6 = smov 0   ;;  %s155_s0 = inlined_call_operand.hbm [shape: f32[16,128], index: 0, kind: input, shape index: {}]   ;;  %s156_s1 = inlined_call_operand.hbm [shape: f32[16,128], index: 1, kind: output, shape index: {}]  }
   0x1 LB: > { %p99_p0 = scmp.eq.s32.totalorder %s127_s6, 0  ;;  %s129_s7 = smov [#allocation2]   ;;  %s127_s6 = sphi %s125_s6, %s11_s6  }
   0x2   : > { %s130_s8 = smov [#allocation3]   ;;  %s131_s9 = smov 0  }
   0x3   : > { %94 = dma.general (%p99_p0), %s155_s0, 128, %s156_s1, %s129_s7, %s130_s8, [#allocation4], %s131_s9, 0  }
   0x4   : > { %118 = dma.done.wait (%p99_p0), [#allocation2], 128 }
   0x5   : > { %120 = vsyncadd (%p99_p0), [#allocation2], 4294967168  ;;  %p100_p1 = scmp.eq.s32.totalorder %s127_s6, 1  ;;  %s37_s16 = scalar_lea.hbm %s155_s0, 128 }
   0x6   : > { %s38_s19 = scalar_lea.hbm %s156_s1, 128  ;;  %s132_s20 = smov [#allocation5]  }
   0x7   : > { %97 = dma.general (%p100_p1), %s37_s16, 128, %s38_s19, %s129_s7, %s132_s20, [#allocation6], %s131_s9, 0  }
   0x8   : > { %122 = dma.done.wait (%p100_p1), [#allocation2], 128 }
   0x9   : > { %124 = vsyncadd (%p100_p1), [#allocation2], 4294967168  ;;  %s11_s6 = sadd.s32 1, %s127_s6  }
   0xa   : > { %p8_p2 = scmp.ge.s32.totalorder %s11_s6, 2  }
   0xc   :  { %10 = sbr.rel (!%p8_p2) target bundleno = 1 (0x1), region = 32 }
  0x13   :  { %55 = vsyncmov [#allocation2] }
  0x16   :  { %s56_s21 = vpop.sfrf %55 }
  0x17   :  { %p89_p3 = scmp.ne.s32.totalorder %s56_s21, 0 }
  0x19   :  { %60 = shalt.err (%p89_p3)  }
  0x1a   :  { %62 = vsyncmov [#allocation2 + $0x1] }
  0x1d   :  { %s63_s22 = vpop.sfrf %62 }
  0x1e   :  { %p90_p4 = scmp.ne.s32.totalorder %s63_s22, 0 }
  0x20   :  { %67 = shalt.err (%p90_p4)  }
  0x21   :  { %69 = vsyncmov [#allocation2 + $0x2] }
  0x24   :  { %s70_s23 = vpop.sfrf %69 }
  0x25   :  { %p91_p5 = scmp.ne.s32.totalorder %s70_s23, 0 }
  0x27   :  { %74 = shalt.err (%p91_p5)  }
  0x28   :  { %76 = vsyncmov [#allocation2 + $0x3] }
  0x2b   :  { %s77_s24 = vpop.sfrf %76 }
  0x2c   :  { %p92_p6 = scmp.ne.s32.totalorder %s77_s24, 0 }
  0x2e   :  { %81 = shalt.err (%p92_p6)  }

</bundles_post_ra>
